<compile_context>
chip_gen: v6e
topology: v6e:2x2x1
jax: 0.10.0
libtpu: 0.0.40
codegen_flags: <defaults>
</compile_context>

<pallas_src>
import functools

import numpy as np
import jax
import jax.numpy as jnp
from jax import lax
from jax.experimental import pallas as pl
from jax.experimental.pallas import tpu as pltpu

_EPS = 1e-5
_LANE = 128


def _round_up(v, mult):
    return (v + mult - 1) // mult * mult


# ----------------------------- in-kernel helpers -----------------------------

def _bn_train(y, g, b):
    """BatchNorm1d (training mode) on (rows, channels): per-channel batch stats over
    all rows (= N*L), biased variance, stable E[(y-mu)^2] form, f32 math."""
    mu = jnp.mean(y, axis=0, keepdims=True)                      # (1, C)
    var = jnp.mean((y - mu) * (y - mu), axis=0, keepdims=True)   # (1, C), >= 0
    return (y - mu) * lax.rsqrt(var + _EPS) * g + b


# ----------------------------- the Pallas kernel -----------------------------

def _make_kernel(has_ds, cpo, m):
    def kernel(*refs):
        if has_ds:
            (xcol_ref, wa_ref, w2_ref, lm_ref, rm_ref,
             g1_ref, b1_ref, g2_ref, b2_ref, gd_ref, bd_ref, o_ref) = refs
        else:
            (xcol_ref, xid_ref, wa_ref, w2_ref, lm_ref, rm_ref,
             g1_ref, b1_ref, g2_ref, b2_ref, o_ref) = refs

        # conv1 (+ fused 1x1 downsample conv): one MXU matmul, bf16 operands, f32 acc.
        ya = jnp.dot(xcol_ref[...], wa_ref[...],
                     preferred_element_type=jnp.float32)         # (M, Cp) or (M, 2*Cp)

        if has_ds:
            y1 = ya[:, :cpo]
            idn = _bn_train(ya[:, cpo:], gd_ref[...], bd_ref[...])
        else:
            y1 = ya
            idn = xid_ref[...]                                   # exact f32 identity

        h1 = jnp.maximum(_bn_train(y1, g1_ref[...], b1_ref[...]), 0.0)   # (M, Cp) f32

        # conv2 (K=3, stride 1, pad 1): +-1 row shifts via XLU rolls; rows whose shifted
        # source crosses a sequence boundary are zeroed by the precomputed (M,1) masks
        # (that is the conv zero-padding).  Then one fused (M,3Cp) x (3Cp,Cp) matmul.
        left = pltpu.roll(h1, shift=1, axis=0) * lm_ref[...]       # h1[row-1]
        right = pltpu.roll(h1, shift=m - 1, axis=0) * rm_ref[...]  # h1[row+1]
        x3 = jnp.concatenate([left, h1, right], axis=1).astype(jnp.bfloat16)
        y2 = jnp.dot(x3, w2_ref[...], preferred_element_type=jnp.float32)   # (M, Cp)

        h2 = _bn_train(y2, g2_ref[...], b2_ref[...])

        # residual add + relu (lane-dense store: Cp is a multiple of 128)
        o_ref[...] = jnp.maximum(h2 + idn, 0.0)

    return kernel


# ----------------------------- wrapper -----------------------------

@functools.partial(jax.jit, static_argnums=(2,))
def basic_block_forward(x, params, stride):
    # x is (N, C_in, L) float32, same as PyTorch nn.Conv1d input.
    n, ci, lin = x.shape
    w1 = params["w1"]
    co = w1.shape[0]
    lout = (lin + 2 - 3) // stride + 1
    m = n * lout
    has_ds = (stride != 1) or (ci != co)
    cpi = _round_up(ci, _LANE)
    cpo = _round_up(co, _LANE)

    f32, bf16 = jnp.float32, jnp.bfloat16

    # ---- host-side prep (pure jnp, compiled once per static shape) ----
    # 3-tap activation im2col for conv1 (kernel 3, pad 1, stride s), channel-padded,
    # shipped in bf16 (halves HBM bytes; no in-kernel cast of the largest operand).
    xt = jnp.transpose(x, (0, 2, 1)).astype(f32)                       # (N, Lin, Ci)
    xp = jnp.zeros((n, lin + 2, cpi), f32).at[:, 1:lin + 1, :ci].set(xt)
    taps = [xp[:, k:k + stride * (lout - 1) + 1:stride, :] for k in range(3)]
    xcol = jnp.concatenate(taps, axis=-1).reshape(m, 3 * cpi).astype(bf16)

    # conv1 weight as per-tap (3*Cpi, Cpo); 1x1 downsample fused as extra columns.
    w1t = jnp.transpose(w1, (2, 1, 0)).astype(f32)                     # (3, Ci, Co)
    w1p = jnp.zeros((3, cpi, cpo), f32).at[:, :ci, :co].set(w1t)
    w1f = w1p.reshape(3 * cpi, cpo)
    if has_ds:
        wd2 = jnp.transpose(params["wd"][:, :, 0]).astype(f32)         # (Ci, Co)
        wdp = jnp.zeros((3 * cpi, cpo), f32).at[cpi:cpi + ci, :co].set(wd2)
        wa = jnp.concatenate([w1f, wdp], axis=1).astype(bf16)          # (3*Cpi, 2*Cpo)
    else:
        wa = w1f.astype(bf16)                                          # (3*Cpi, Cpo)

    # conv2 per-tap weights stacked along the contraction axis -> one (3*Cpo, Cpo).
    w2t = jnp.transpose(params["w2"], (2, 1, 0)).astype(f32)           # (3, Co, Co)
    w2p = jnp.zeros((3, cpo, cpo), f32).at[:, :co, :co].set(w2t)
    w2f = w2p.reshape(3 * cpo, cpo).astype(bf16)

    # sequence-boundary masks for the +-1 row shifts (pure geometry, loop-invariant).
    l_pos = jnp.arange(m, dtype=jnp.int32) % lout
    lmask = (l_pos >= 1).astype(f32).reshape(m, 1)
    rmask = (l_pos <= lout - 2).astype(f32).reshape(m, 1)

    def row(name):  # per-channel affine param -> (1, Cpo) f32 row, zero-padded
        return jnp.zeros((1, cpo), f32).at[0, :co].set(params[name].astype(f32))

    args = [xcol]
    if not has_ds:
        # exact f32 identity (= x in rows-channels layout), channel-padded
        xid = jnp.zeros((n, lout, cpo), f32).at[:, :, :ci].set(xt).reshape(m, cpo)
        args.append(xid)
    args += [wa, w2f, lmask, rmask, row("g1"), row("b1"), row("g2"), row("b2")]
    if has_ds:
        args += [row("gd"), row("bd")]

    out2 = pl.pallas_call(
        _make_kernel(has_ds, cpo, m),
        out_shape=jax.ShapeDtypeStruct((m, cpo), f32),
        compiler_params=pltpu.CompilerParams(vmem_limit_bytes=32 * 1024 * 1024),
    )(*args)

    out2 = out2[:, :co].reshape(n, lout, co)
    return jnp.transpose(out2, (0, 2, 1))                              # (N, Co, Lout)


# ----------------------------- pure-JAX reference -----------------------------

def basic_block_reference(x, params, stride):
    def conv1d(y, w, s, pad):
        return lax.conv_general_dilated(
            y, w, window_strides=(s,), padding=[(pad, pad)],
            dimension_numbers=("NCH", "OIH", "NCH"))

    def bn(y, g, b):
        mu = jnp.mean(y, axis=(0, 2), keepdims=True)
        var = jnp.mean((y - mu) ** 2, axis=(0, 2), keepdims=True)
        return (y - mu) * lax.rsqrt(var + _EPS) * g[None, :, None] + b[None, :, None]

    ci = x.shape[1]
    co = params["w1"].shape[0]
    h = jax.nn.relu(bn(conv1d(x, params["w1"], stride, 1), params["g1"], params["b1"]))
    h = bn(conv1d(h, params["w2"], 1, 1), params["g2"], params["b2"])
    if stride != 1 or ci != co:
        idn = bn(conv1d(x, params["wd"], stride, 0), params["gd"], params["bd"])
    else:
        idn = x
    return jax.nn.relu(h + idn)


# ----------------------------- deterministic parameter init -----------------------------

def init_params(key, ci, co, stride):
    ks = jax.random.split(key, 3)
    p = {
        "w1": jax.random.normal(ks[0], (co, ci, 3), jnp.float32) / np.sqrt(3 * ci),
        "w2": jax.random.normal(ks[1], (co, co, 3), jnp.float32) / np.sqrt(3 * co),
        "g1": jnp.linspace(0.8, 1.2, co, dtype=jnp.float32),
        "b1": jnp.linspace(-0.1, 0.1, co, dtype=jnp.float32),
        "g2": jnp.linspace(1.1, 0.9, co, dtype=jnp.float32),
        "b2": jnp.linspace(0.05, -0.05, co, dtype=jnp.float32),
    }
    if stride != 1 or ci != co:
        p["wd"] = jax.random.normal(ks[2], (co, ci, 1), jnp.float32) / np.sqrt(ci)
        p["gd"] = jnp.linspace(0.95, 1.05, co, dtype=jnp.float32)
        p["bd"] = jnp.linspace(-0.02, 0.02, co, dtype=jnp.float32)
    return p


if __name__ == "__main__":
    key = jax.random.PRNGKey(0)
    kx, kp1, kp2 = jax.random.split(key, 3)

    # Case 1: stride=2, 4 -> 8 channels (downsample branch active).
    x1 = jax.random.normal(kx, (2, 4, 16), jnp.float32)
    p1 = init_params(kp1, 4, 8, 2)
    y1 = jax.block_until_ready(basic_block_forward(x1, p1, 2))
    r1 = basic_block_reference(x1, p1, 2)
    assert y1.shape == (2, 8, 8)
    # tolerance accounts for intentional bf16 matmul inputs (f32 accumulation)
    np.testing.assert_allclose(np.asarray(y1), np.asarray(r1), rtol=2e-2, atol=2e-2)

    # Case 2: stride=1, same channels (identity shortcut, exact f32 residual path).
    x2 = jax.random.normal(kx, (2, 8, 16), jnp.float32)
    p2 = init_params(kp2, 8, 8, 1)
    y2 = jax.block_until_ready(basic_block_forward(x2, p2, 1))
    r2 = basic_block_reference(x2, p2, 1)
    assert y2.shape == (2, 8, 16)
    np.testing.assert_allclose(np.asarray(y2), np.asarray(r2), rtol=2e-2, atol=2e-2)

    print("KERNEL_OK")
</pallas_src>

<mosaic_0001>
module attributes {stable_mosaic.version = 11 : i64} {
  func.func @kernel(%arg0: memref<16x384xbf16, #tpu.memory_space<vmem>>, %arg1: memref<384x256xbf16, #tpu.memory_space<vmem>>, %arg2: memref<384x128xbf16, #tpu.memory_space<vmem>>, %arg3: memref<16x1xf32, #tpu.memory_space<vmem>>, %arg4: memref<16x1xf32, #tpu.memory_space<vmem>>, %arg5: memref<1x128xf32, #tpu.memory_space<vmem>>, %arg6: memref<1x128xf32, #tpu.memory_space<vmem>>, %arg7: memref<1x128xf32, #tpu.memory_space<vmem>>, %arg8: memref<1x128xf32, #tpu.memory_space<vmem>>, %arg9: memref<1x128xf32, #tpu.memory_space<vmem>>, %arg10: memref<1x128xf32, #tpu.memory_space<vmem>>, %arg11: memref<16x128xf32, #tpu.memory_space<vmem>>) attributes {dimension_semantics = [], scalar_prefetch = 0 : i64, scratch_operands = 0 : i64, tpu.core_type = #tpu.core_type<tc>} {
    %c0 = arith.constant 0 : index
    %c0_0 = arith.constant 0 : index
    %0 = vector.load %arg0[%c0, %c0_0] : memref<16x384xbf16, #tpu.memory_space<vmem>>, vector<16x384xbf16>
    %c0_1 = arith.constant 0 : index
    %c0_2 = arith.constant 0 : index
    %1 = vector.load %arg1[%c0_1, %c0_2] : memref<384x256xbf16, #tpu.memory_space<vmem>>, vector<384x256xbf16>
    %cst = arith.constant dense<0.000000e+00> : vector<16x256xf32>
    %2 = tpu.matmul %0, %1, %cst {dimension_numbers = #tpu.dot_dimension_numbers<[1], [0], [0], [1], [0, 0, 1, 1], [], []>} : vector<16x384xbf16>, vector<384x256xbf16>, vector<16x256xf32> -> vector<16x256xf32>
    %3 = vector.extract_strided_slice %2 {offsets = [0, 0], sizes = [16, 128], strides = [1, 1]} : vector<16x256xf32> to vector<16x128xf32>
    %4 = vector.extract_strided_slice %2 {offsets = [0, 128], sizes = [16, 128], strides = [1, 1]} : vector<16x256xf32> to vector<16x128xf32>
    %c0_3 = arith.constant 0 : index
    %c0_4 = arith.constant 0 : index
    %5 = vector.load %arg9[%c0_3, %c0_4] : memref<1x128xf32, #tpu.memory_space<vmem>>, vector<1x128xf32>
    %c0_5 = arith.constant 0 : index
    %c0_6 = arith.constant 0 : index
    %6 = vector.load %arg10[%c0_5, %c0_6] : memref<1x128xf32, #tpu.memory_space<vmem>>, vector<1x128xf32>
    %cst_7 = arith.constant dense<0.000000e+00> : vector<128xf32>
    %7 = vector.multi_reduction <add>, %4, %cst_7 [0] : vector<16x128xf32> to vector<128xf32>
    %8 = vector.shape_cast %7 : vector<128xf32> to vector<1x128xf32>
    %cst_8 = arith.constant 1.600000e+01 : f32
    %9 = vector.broadcast %cst_8 : f32 to vector<1x128xf32>
    %10 = arith.divf %8, %9 : vector<1x128xf32>
    %11 = vector.broadcast %10 : vector<1x128xf32> to vector<16x128xf32>
    %12 = arith.subf %4, %11 : vector<16x128xf32>
    %13 = vector.broadcast %10 : vector<1x128xf32> to vector<16x128xf32>
    %14 = arith.subf %4, %13 : vector<16x128xf32>
    %15 = arith.mulf %12, %14 : vector<16x128xf32>
    %cst_9 = arith.constant dense<0.000000e+00> : vector<128xf32>
    %16 = vector.multi_reduction <add>, %15, %cst_9 [0] : vector<16x128xf32> to vector<128xf32>
    %17 = vector.shape_cast %16 : vector<128xf32> to vector<1x128xf32>
    %cst_10 = arith.constant 1.600000e+01 : f32
    %18 = vector.broadcast %cst_10 : f32 to vector<1x128xf32>
    %19 = arith.divf %17, %18 : vector<1x128xf32>
    %20 = vector.broadcast %10 : vector<1x128xf32> to vector<16x128xf32>
    %21 = arith.subf %4, %20 : vector<16x128xf32>
    %cst_11 = arith.constant 9.99999974E-6 : f32
    %22 = vector.broadcast %cst_11 : f32 to vector<1x128xf32>
    %23 = arith.addf %19, %22 : vector<1x128xf32>
    %24 = math.rsqrt %23 : vector<1x128xf32>
    %25 = vector.broadcast %24 : vector<1x128xf32> to vector<16x128xf32>
    %26 = arith.mulf %21, %25 : vector<16x128xf32>
    %27 = vector.broadcast %5 : vector<1x128xf32> to vector<16x128xf32>
    %28 = arith.mulf %26, %27 : vector<16x128xf32>
    %29 = vector.broadcast %6 : vector<1x128xf32> to vector<16x128xf32>
    %30 = arith.addf %28, %29 : vector<16x128xf32>
    %c0_12 = arith.constant 0 : index
    %c0_13 = arith.constant 0 : index
    %31 = vector.load %arg5[%c0_12, %c0_13] : memref<1x128xf32, #tpu.memory_space<vmem>>, vector<1x128xf32>
    %c0_14 = arith.constant 0 : index
    %c0_15 = arith.constant 0 : index
    %32 = vector.load %arg6[%c0_14, %c0_15] : memref<1x128xf32, #tpu.memory_space<vmem>>, vector<1x128xf32>
    %cst_16 = arith.constant dense<0.000000e+00> : vector<128xf32>
    %33 = vector.multi_reduction <add>, %3, %cst_16 [0] : vector<16x128xf32> to vector<128xf32>
    %34 = vector.shape_cast %33 : vector<128xf32> to vector<1x128xf32>
    %cst_17 = arith.constant 1.600000e+01 : f32
    %35 = vector.broadcast %cst_17 : f32 to vector<1x128xf32>
    %36 = arith.divf %34, %35 : vector<1x128xf32>
    %37 = vector.broadcast %36 : vector<1x128xf32> to vector<16x128xf32>
    %38 = arith.subf %3, %37 : vector<16x128xf32>
    %39 = vector.broadcast %36 : vector<1x128xf32> to vector<16x128xf32>
    %40 = arith.subf %3, %39 : vector<16x128xf32>
    %41 = arith.mulf %38, %40 : vector<16x128xf32>
    %cst_18 = arith.constant dense<0.000000e+00> : vector<128xf32>
    %42 = vector.multi_reduction <add>, %41, %cst_18 [0] : vector<16x128xf32> to vector<128xf32>
    %43 = vector.shape_cast %42 : vector<128xf32> to vector<1x128xf32>
    %cst_19 = arith.constant 1.600000e+01 : f32
    %44 = vector.broadcast %cst_19 : f32 to vector<1x128xf32>
    %45 = arith.divf %43, %44 : vector<1x128xf32>
    %46 = vector.broadcast %36 : vector<1x128xf32> to vector<16x128xf32>
    %47 = arith.subf %3, %46 : vector<16x128xf32>
    %cst_20 = arith.constant 9.99999974E-6 : f32
    %48 = vector.broadcast %cst_20 : f32 to vector<1x128xf32>
    %49 = arith.addf %45, %48 : vector<1x128xf32>
    %50 = math.rsqrt %49 : vector<1x128xf32>
    %51 = vector.broadcast %50 : vector<1x128xf32> to vector<16x128xf32>
    %52 = arith.mulf %47, %51 : vector<16x128xf32>
    %53 = vector.broadcast %31 : vector<1x128xf32> to vector<16x128xf32>
    %54 = arith.mulf %52, %53 : vector<16x128xf32>
    %55 = vector.broadcast %32 : vector<1x128xf32> to vector<16x128xf32>
    %56 = arith.addf %54, %55 : vector<16x128xf32>
    %cst_21 = arith.constant 0.000000e+00 : f32
    %57 = vector.broadcast %cst_21 : f32 to vector<16x128xf32>
    %58 = arith.maximumf %56, %57 : vector<16x128xf32>
    %c1_i32 = arith.constant 1 : i32
    %59 = tpu.dynamic_rotate %58 by %c1_i32 dim 0 : vector<16x128xf32>, i32 -> vector<16x128xf32>
    %c0_22 = arith.constant 0 : index
    %c0_23 = arith.constant 0 : index
    %60 = vector.load %arg3[%c0_22, %c0_23] : memref<16x1xf32, #tpu.memory_space<vmem>>, vector<16x1xf32>
    %61 = vector.broadcast %60 : vector<16x1xf32> to vector<16x128xf32>
    %62 = arith.mulf %59, %61 : vector<16x128xf32>
    %c15_i32 = arith.constant 15 : i32
    %63 = tpu.dynamic_rotate %58 by %c15_i32 dim 0 : vector<16x128xf32>, i32 -> vector<16x128xf32>
    %c0_24 = arith.constant 0 : index
    %c0_25 = arith.constant 0 : index
    %64 = vector.load %arg4[%c0_24, %c0_25] : memref<16x1xf32, #tpu.memory_space<vmem>>, vector<16x1xf32>
    %65 = vector.broadcast %64 : vector<16x1xf32> to vector<16x128xf32>
    %66 = arith.mulf %63, %65 : vector<16x128xf32>
    %67 = tpu.concatenate %62, %58, %66 in 1 : vector<16x128xf32>, vector<16x128xf32>, vector<16x128xf32> -> vector<16x384xf32>
    %68 = arith.truncf %67 : vector<16x384xf32> to vector<16x384xbf16>
    %c0_26 = arith.constant 0 : index
    %c0_27 = arith.constant 0 : index
    %69 = vector.load %arg2[%c0_26, %c0_27] : memref<384x128xbf16, #tpu.memory_space<vmem>>, vector<384x128xbf16>
    %cst_28 = arith.constant dense<0.000000e+00> : vector<16x128xf32>
    %70 = tpu.matmul %68, %69, %cst_28 {dimension_numbers = #tpu.dot_dimension_numbers<[1], [0], [0], [1], [0, 0, 1, 1], [], []>} : vector<16x384xbf16>, vector<384x128xbf16>, vector<16x128xf32> -> vector<16x128xf32>
    %c0_29 = arith.constant 0 : index
    %c0_30 = arith.constant 0 : index
    %71 = vector.load %arg7[%c0_29, %c0_30] : memref<1x128xf32, #tpu.memory_space<vmem>>, vector<1x128xf32>
    %c0_31 = arith.constant 0 : index
    %c0_32 = arith.constant 0 : index
    %72 = vector.load %arg8[%c0_31, %c0_32] : memref<1x128xf32, #tpu.memory_space<vmem>>, vector<1x128xf32>
    %cst_33 = arith.constant dense<0.000000e+00> : vector<128xf32>
    %73 = vector.multi_reduction <add>, %70, %cst_33 [0] : vector<16x128xf32> to vector<128xf32>
    %74 = vector.shape_cast %73 : vector<128xf32> to vector<1x128xf32>
    %cst_34 = arith.constant 1.600000e+01 : f32
    %75 = vector.broadcast %cst_34 : f32 to vector<1x128xf32>
    %76 = arith.divf %74, %75 : vector<1x128xf32>
    %77 = vector.broadcast %76 : vector<1x128xf32> to vector<16x128xf32>
    %78 = arith.subf %70, %77 : vector<16x128xf32>
    %79 = vector.broadcast %76 : vector<1x128xf32> to vector<16x128xf32>
    %80 = arith.subf %70, %79 : vector<16x128xf32>
    %81 = arith.mulf %78, %80 : vector<16x128xf32>
    %cst_35 = arith.constant dense<0.000000e+00> : vector<128xf32>
    %82 = vector.multi_reduction <add>, %81, %cst_35 [0] : vector<16x128xf32> to vector<128xf32>
    %83 = vector.shape_cast %82 : vector<128xf32> to vector<1x128xf32>
    %cst_36 = arith.constant 1.600000e+01 : f32
    %84 = vector.broadcast %cst_36 : f32 to vector<1x128xf32>
    %85 = arith.divf %83, %84 : vector<1x128xf32>
    %86 = vector.broadcast %76 : vector<1x128xf32> to vector<16x128xf32>
    %87 = arith.subf %70, %86 : vector<16x128xf32>
    %cst_37 = arith.constant 9.99999974E-6 : f32
    %88 = vector.broadcast %cst_37 : f32 to vector<1x128xf32>
    %89 = arith.addf %85, %88 : vector<1x128xf32>
    %90 = math.rsqrt %89 : vector<1x128xf32>
    %91 = vector.broadcast %90 : vector<1x128xf32> to vector<16x128xf32>
    %92 = arith.mulf %87, %91 : vector<16x128xf32>
    %93 = vector.broadcast %71 : vector<1x128xf32> to vector<16x128xf32>
    %94 = arith.mulf %92, %93 : vector<16x128xf32>
    %95 = vector.broadcast %72 : vector<1x128xf32> to vector<16x128xf32>
    %96 = arith.addf %94, %95 : vector<16x128xf32>
    %97 = arith.addf %96, %30 : vector<16x128xf32>
    %cst_38 = arith.constant 0.000000e+00 : f32
    %98 = vector.broadcast %cst_38 : f32 to vector<16x128xf32>
    %99 = arith.maximumf %97, %98 : vector<16x128xf32>
    %c0_39 = arith.constant 0 : index
    %c0_40 = arith.constant 0 : index
    %100 = vector.load %arg11[%c0_39, %c0_40] : memref<16x128xf32, #tpu.memory_space<vmem>>, vector<16x128xf32>
    tpu.vector_store %arg11[%c0_39, %c0_40], %99 {strides = array<i32>} : memref<16x128xf32, #tpu.memory_space<vmem>>, vector<16x128xf32>,
    return
  }
}

</mosaic_0001>

<bundles_post_ra>
// kernel: basic_block_forward.1
= control target key start
LH: loop header
LB: loop body
LE: loop exit
PB: predicated region body
PF: predicated region fallthrough
CT: control target
= control target key end

     0   :  { %v1132_v1 = vmov 0   ;;  %v1133_v58 = vmov 0.0   ;;  %vm1134_vm0 = vmmov 0   ;;  %s1460_s1 = inlined_call_operand.vmem [shape: bf16[384,256], index: 1, kind: input, shape index: {}]   ;;  %s1461_s0 = inlined_call_operand.vmem [shape: bf16[16,384], index: 0, kind: input, shape index: {}]   ;;  %s1462_s3 = inlined_call_operand.vmem [shape: f32[16,1], index: 3, kind: input, shape index: {}]   ;;  %s1463_s4 = inlined_call_operand.vmem [shape: f32[16,1], index: 4, kind: input, shape index: {}]   ;;  %s1464_s2 = inlined_call_operand.vmem [shape: bf16[384,128], index: 2, kind: input, shape index: {}]   ;;  %s1465_s5 = inlined_call_operand.vmem [shape: f32[1,128], index: 5, kind: input, shape index: {}]   ;;  %s1466_s6 = inlined_call_operand.vmem [shape: f32[1,128], index: 6, kind: input, shape index: {}]   ;;  %s1467_s9 = inlined_call_operand.vmem [shape: f32[1,128], index: 9, kind: input, shape index: {}]   ;;  %s1468_s7 = inlined_call_operand.vmem [shape: f32[1,128], index: 7, kind: input, shape index: {}]   ;;  %s1469_s10 = inlined_call_operand.vmem [shape: f32[1,128], index: 10, kind: input, shape index: {}]   ;;  %s1470_s8 = inlined_call_operand.vmem [shape: f32[1,128], index: 8, kind: input, shape index: {}]   ;;  %s1471_s11 = inlined_call_operand.vmem [shape: f32[16,128], index: 11, kind: output, shape index: {}]  }
   0x1   :  { %v1026_v0 = vld [vmem:[%s1460_s1 + $0x74] ss:$8 sps:$4 sm:$0xff]   ;;  %422 = vmatprep.mubr.bf16.mxu1 %v1132_v1  ;;  %1024 = vset.pattern.permute.xlu0 %v1132_v1  ;;  %v1028_v2 = vld [vmem:[%s1460_s1 + $0x70] ss:$8 sps:$4 sm:$0xff]   ;;  %v1029_v3 = vld [vmem:[%s1460_s1 + $0x64] ss:$8 sps:$4 sm:$0xff]  }
   0x2   :  { %1025 = vset.pattern.permute.xlu1 %v1132_v1  ;;  %347 = vmatprep.subr.bf16.mxu0 %v1026_v0  ;;  %v1031_v4 = vld [vmem:[%s1460_s1 + $0x60] ss:$8 sps:$4 sm:$0xff]   ;;  %v1032_v5 = vld [vmem:[%s1460_s1 + $0x54] ss:$8 sps:$4 sm:$0xff]   ;;  %v1034_v6 = vld [vmem:[%s1460_s1 + $0x50] ss:$8 sps:$4 sm:$0xff]  }
   0x3   :  { %348 = vmatpush1.bf16.msra.mxu0 %v1028_v2  ;;  %v1035_v7 = vld [vmem:[%s1460_s1 + $0x44] ss:$8 sps:$4 sm:$0xff]   ;;  %v1047_v8 = vld [vmem:[%s1460_s1 + $0x174] ss:$8 sps:$4 sm:$0xff]   ;;  %v1049_v9 = vld [vmem:[%s1460_s1 + $0x170] ss:$8 sps:$4 sm:$0xff]  }
   0x4   :  { %349 = vmatprep.subr.bf16.mxu0 %v1029_v3  ;;  %v1037_v10 = vld [vmem:[%s1460_s1 + $0x40] ss:$8 sps:$4 sm:$0xff]   ;;  %v1038_v11 = vld [vmem:[%s1460_s1 + $0x34] ss:$8 sps:$4 sm:$0xff]   ;;  %390 = vmatprep.subr.bf16.mxu1 %v1047_v8  ;;  %v1053_v12 = vld [vmem:[%s1460_s1 + $0x164] ss:$8 sps:$4 sm:$0xff]  }
   0x5   :  { %391 = vmatpush1.bf16.msra.mxu1 %v1049_v9  ;;  %v1055_v13 = vld [vmem:[%s1460_s1 + $0x160] ss:$8 sps:$4 sm:$0xff]   ;;  %v1040_v14 = vld [vmem:[%s1460_s1 + $0x30] ss:$8 sps:$4 sm:$0xff]   ;;  %v1059_v15 = vld [vmem:[%s1460_s1 + $0x154] ss:$8 sps:$4 sm:$0xff]  }
   0x6   :  { %392 = vmatprep.subr.bf16.mxu1 %v1053_v12  ;;  %v1041_v16 = vld [vmem:[%s1460_s1 + $0x24] ss:$8 sps:$4 sm:$0xff]   ;;  %v1061_v17 = vld [vmem:[%s1460_s1 + $0x150] ss:$8 sps:$4 sm:$0xff]   ;;  %v1043_v19 = vld [vmem:[%s1460_s1 + $0x20] ss:$8 sps:$4 sm:$0xff]  }
   0x7   :  { %350 = vmatpush1.bf16.msra.mxu0 %v1031_v4  ;;  %v1065_v18 = vld [vmem:[%s1460_s1 + $0x144] ss:$8 sps:$4 sm:$0xff]   ;;  %v1044_v20 = vld [vmem:[%s1460_s1 + $0x14] ss:$8 sps:$4 sm:$0xff]   ;;  %v1067_v21 = vld [vmem:[%s1460_s1 + $0x140] ss:$8 sps:$4 sm:$0xff]  }
   0x8   :  { %351 = vmatprep.subr.bf16.mxu0 %v1032_v5  ;;  %v1071_v22 = vld [vmem:[%s1460_s1 + $0x134] ss:$8 sps:$4 sm:$0xff]   ;;  %v1046_v23 = vld [vmem:[%s1460_s1 + $0x10] ss:$8 sps:$4 sm:$0xff]   ;;  %v1050_v24 = vld [vmem:[%s1460_s1 + $0x4] ss:$8 sps:$4 sm:$0xff]  }
   0x9   :  { %393 = vmatpush1.bf16.msra.mxu1 %v1055_v13  ;;  %v1073_v25 = vld [vmem:[%s1460_s1 + $0x130] ss:$8 sps:$4 sm:$0xff]   ;;  %v1077_v26 = vld [vmem:[%s1460_s1 + $0x124] ss:$8 sps:$4 sm:$0xff]   ;;  %v1052_v27 = vld [vmem:[%s1460_s1] ss:$8 sps:$4 sm:$0xff]  }
   0xa   :  { %394 = vmatprep.subr.bf16.mxu1 %v1059_v15  ;;  %v1056_v28 = vld [vmem:[%s1460_s1 + $0xf4] ss:$8 sps:$4 sm:$0xff]   ;;  %v1079_v29 = vld [vmem:[%s1460_s1 + $0x120] ss:$8 sps:$4 sm:$0xff]   ;;  %v1058_v31 = vld [vmem:[%s1460_s1 + $0xf0] ss:$8 sps:$4 sm:$0xff]  }
   0xb   :  { %352 = vmatpush1.bf16.msra.mxu0 %v1034_v6  ;;  %v1083_v30 = vld [vmem:[%s1460_s1 + $0x114] ss:$8 sps:$4 sm:$0xff]   ;;  %v1062_v32 = vld [vmem:[%s1460_s1 + $0xe4] ss:$8 sps:$4 sm:$0xff]   ;;  %v1085_v33 = vld [vmem:[%s1460_s1 + $0x110] ss:$8 sps:$4 sm:$0xff]  }
   0xc   :  { %353 = vmatprep.subr.bf16.mxu0 %v1035_v7  ;;  %v1089_v34 = vld [vmem:[%s1460_s1 + $0x104] ss:$8 sps:$4 sm:$0xff]   ;;  %v1064_v38 = vld [vmem:[%s1460_s1 + $0xe0] ss:$8 sps:$4 sm:$0xff]   ;;  %v1068_v39 = vld [vmem:[%s1460_s1 + $0xd4] ss:$8 sps:$4 sm:$0xff]  }
   0xd   :  { %395 = vmatpush1.bf16.msra.mxu1 %v1061_v17  ;;  %v1101_v35 = vld [vmem:[%s1461_s0 + $0x4] ss:$12 sps:$4 sm:$0xff]   ;;  %v528_v40 = vld [vmem:[%s1462_s3 + $0x8] sm:$0xff]  ;;  %v1080_v47 = vld [vmem:[%s1460_s1 + $0xb4] ss:$8 sps:$4 sm:$0xff]  }
   0xe   :  { %396 = vmatprep.subr.bf16.mxu1 %v1065_v18  ;;  %v527_v36 = vld [vmem:[%s1462_s3] sm:$0xff]  ;;  %379 = vmatprep.mubr.bf16.mxu0 %v1101_v35  ;;  %v547_v42 = vld [vmem:[%s1463_s4 + $0x8] sm:$0xff]  ;;  %v1070_v43 = vld [vmem:[%s1460_s1 + $0xd0] ss:$8 sps:$4 sm:$0xff]  }
   0xf   :  { %354 = vmatpush1.bf16.msra.mxu0 %v1037_v10  ;;  %v546_v37 = vld [vmem:[%s1463_s4] sm:$0xff]  ;;  %531 = vperm.xlu0 %1024, %v527_v36   ;;  %v1095_v45 = vld [vmem:[%s1461_s0 + $0x8] ss:$12 sps:$4 sm:$0xff]   ;;  %v1082_v48 = vld [vmem:[%s1460_s1 + $0xb0] ss:$8 sps:$4 sm:$0xff]  }
  0x10   :  { %355 = vmatprep.subr.bf16.mxu0 %v1038_v11  ;;  %v1091_v41 = vld [vmem:[%s1460_s1 + $0x100] ss:$8 sps:$4 sm:$0xff]   ;;  %550 = vperm.xlu1 %1025, %v546_v37   ;;  %v1074_v44 = vld [vmem:[%s1460_s1 + $0xc4] ss:$8 sps:$4 sm:$0xff]   ;;  %v1092_v51 = vld [vmem:[%s1460_s1 + $0x94] ss:$8 sps:$4 sm:$0xff]  }
  0x11   :  { %397 = vmatpush1.bf16.msra.mxu1 %v1067_v21  ;;  %v1076_v46 = vld [vmem:[%s1460_s1 + $0xc0] ss:$8 sps:$4 sm:$0xff]   ;;  %v1086_v49 = vld [vmem:[%s1460_s1 + $0xa4] ss:$8 sps:$4 sm:$0xff]   ;;  %v1094_v52 = vld [vmem:[%s1460_s1 + $0x90] ss:$8 sps:$4 sm:$0xff]  }
  0x12   :  { %398 = vmatprep.subr.bf16.mxu1 %v1071_v22  ;;  %v1088_v50 = vld [vmem:[%s1460_s1 + $0xa0] ss:$8 sps:$4 sm:$0xff]   ;;  %v1096_v53 = vld [vmem:[%s1460_s1 + $0x84] ss:$8 sps:$4 sm:$0xff]   ;;  %v1102_v56 = vld [vmem:[%s1464_s2 + $0x78] sm:$0xff]  }
  0x13   :  { %356 = vmatpush1.bf16.msra.mxu0 %v1040_v14  ;;  %536 = vperm.xlu0 %1024, %v528_v40   ;;  %v1098_v54 = vld [vmem:[%s1460_s1 + $0x80] ss:$8 sps:$4 sm:$0xff]   ;;  %v1103_v57 = vld [vmem:[%s1464_s2 + $0x38] sm:$0xff]   ;;  %v1105_v60 = vld [vmem:[%s1464_s2 + $0x70] sm:$0xff]  }
  0x14   :  { %357 = vmatprep.subr.bf16.mxu0 %v1041_v16  ;;  %555 = vperm.xlu1 %1025, %v547_v42   ;;  %v1099_v55 = vld [vmem:[%s1461_s0] ss:$12 sps:$4 sm:$0xff]   ;;  %v1104_v59 = vld [vmem:[%s1464_s2 + $0xb8] sm:$0xff]   ;;  %v1106_v61 = vld [vmem:[%s1464_s2 + $0x30] sm:$0xff]  }
  0x15   :  { %399 = vmatpush1.bf16.msra.mxu1 %v1073_v25  ;;  %v1107_v62 = vld [vmem:[%s1464_s2 + $0xb0] sm:$0xff]   ;;  %v1108_v63 = vld [vmem:[%s1464_s2 + $0x68] sm:$0xff]   ;;  %v1111_v2 = vld [vmem:[%s1464_s2 + $0x60] sm:$0xff]  }
  0x16   :  { %400 = vmatprep.subr.bf16.mxu1 %v1077_v26  ;;  %v1109_v0 = vld [vmem:[%s1464_s2 + $0x28] sm:$0xff]   ;;  %v1112_v3 = vld [vmem:[%s1464_s2 + $0x20] sm:$0xff]   ;;  %v1114_v5 = vld [vmem:[%s1464_s2 + $0x58] sm:$0xff]  }
  0x17   :  { %358 = vmatpush1.bf16.msra.mxu0 %v1043_v19  ;;  %v1110_v1 = vld [vmem:[%s1464_s2 + $0xa8] sm:$0xff]   ;;  %v1113_v4 = vld [vmem:[%s1464_s2 + $0xa0] sm:$0xff]   ;;  %v1115_v6 = vld [vmem:[%s1464_s2 + $0x18] sm:$0xff]  }
  0x18   :  { %359 = vmatprep.subr.bf16.mxu0 %v1044_v20  ;;  %v1116_v7 = vld [vmem:[%s1464_s2 + $0x98] sm:$0xff]   ;;  %v1117_v8 = vld [vmem:[%s1464_s2 + $0x50] sm:$0xff]   ;;  %v1120_v11 = vld [vmem:[%s1464_s2 + $0x48] sm:$0xff]  }
  0x19   :  { %401 = vmatpush1.bf16.msra.mxu1 %v1079_v29  ;;  %v1118_v9 = vld [vmem:[%s1464_s2 + $0x10] sm:$0xff]   ;;  %v1121_v12 = vld [vmem:[%s1464_s2 + $0x8] sm:$0xff]   ;;  %v1123_v14 = vld [vmem:[%s1464_s2 + $0x40] sm:$0xff]  }
  0x1a   :  { %402 = vmatprep.subr.bf16.mxu1 %v1083_v30  ;;  %v1119_v10 = vld [vmem:[%s1464_s2 + $0x90] sm:$0xff]   ;;  %v1122_v13 = vld [vmem:[%s1464_s2 + $0x88] sm:$0xff]   ;;  %v1124_v15 = vld [vmem:[%s1464_s2] sm:$0xff]  }
  0x1b   :  { %360 = vmatpush1.bf16.msra.mxu0 %v1046_v23  ;;  %v1125_v16 = vld [vmem:[%s1464_s2 + $0x80] sm:$0xff]  }
  0x1c   :  { %361 = vmatprep.subr.bf16.mxu0 %v1050_v24 }
  0x1d   :  { %403 = vmatpush1.bf16.msra.mxu1 %v1085_v33 }
  0x1e   :  { %404 = vmatprep.subr.bf16.mxu1 %v1089_v34 }
  0x1f   :  { %362 = vmatpush1.bf16.msra.mxu0 %v1052_v27 }
  0x20   :  { %363 = vmatprep.subr.bf16.mxu0 %v1056_v28 }
  0x21   :  { %405 = vmatpush1.bf16.msra.mxu1 %v1091_v41 }
  0x22   :  { %970 = vmatprep.subr.bf16.mxu1 %v1102_v56 }
  0x23   :  { %364 = vmatpush2.bf16.msra.mxu0 %v1058_v31 }
  0x24   :  { %365 = vmatprep.subr.bf16.mxu0 %v1062_v32  ;;  %423 = vmatmul.mubr.bf16.vlgmr.msra.gmra.mxu1 %v1095_v45 }
  0x25   :  { %971 = vmatpush3.bf16.msra.mxu1 %v1103_v57 }
  0x26   :  { %972 = vmatprep.subr.bf16.mxu1 %v1105_v60 }
  0x27   :  { %366 = vmatpush2.bf16.msra.mxu0 %v1064_v38 }
  0x28   :  { %367 = vmatprep.subr.bf16.mxu0 %v1068_v39 }
  0x29   :  { %973 = vmatpush3.bf16.msra.mxu1 %v1106_v61 }
  0x2a   :  { %974 = vmatprep.subr.bf16.mxu1 %v1108_v63 }
  0x2b   :  { %368 = vmatpush2.bf16.msra.mxu0 %v1070_v43 }
  0x2c   :  { %369 = vmatprep.subr.bf16.mxu0 %v1074_v44 }
  0x2d   :  { %975 = vmatpush3.bf16.msra.mxu1 %v1109_v0 }
  0x2e   :  { %976 = vmatprep.subr.bf16.mxu1 %v1111_v2 }
  0x2f   :  { %370 = vmatpush2.bf16.msra.mxu0 %v1076_v46 }
  0x30   :  { %371 = vmatprep.subr.bf16.mxu0 %v1080_v47 }
  0x31   :  { %977 = vmatpush3.bf16.msra.mxu1 %v1112_v3 }
  0x32   :  { %978 = vmatprep.subr.bf16.mxu1 %v1114_v5 }
  0x33   :  { %372 = vmatpush2.bf16.msra.mxu0 %v1082_v48  ;;  %v942_v48 = vld [vmem:[%s1465_s5] ss:$0 sm:$0xff] }
  0x34   :  { %373 = vmatprep.subr.bf16.mxu0 %v1086_v49  ;;  %v522_v49 = vlaneseq }
  0x35   :  { %979 = vmatpush3.bf16.msra.mxu1 %v1115_v6 }
  0x36   :  { %980 = vmatprep.subr.bf16.mxu1 %v1117_v8  ;;  %v523_v56 = vshrl.u32 %v522_v49, 7 }
  0x37   :  { %374 = vmatpush2.bf16.msra.mxu0 %v1088_v50 }
  0x38   :  { %375 = vmatprep.subr.bf16.mxu0 %v1092_v51  ;;  %vm524_vm1 = vcmp.lt.s32.totalorder %v523_v56, 1  ;;  %vm543_vm2 = vcmp.lt.s32.totalorder %v523_v56, 7 }
  0x39   :  { %981 = vmatpush3.bf16.msra.mxu1 %v1118_v9 }
  0x3a   :  { %982 = vmatprep.subr.bf16.mxu1 %v1120_v11 }
  0x3b   :  { %376 = vmatpush2.bf16.msra.mxu0 %v1094_v52  ;;  %v943_v52 = vld [vmem:[%s1466_s6] ss:$0 sm:$0xff] }
  0x3c   :  { %377 = vmatprep.subr.bf16.mxu0 %v1096_v53 }
  0x3d   :  { %983 = vmatpush3.bf16.msra.mxu1 %v1121_v12 }
  0x3e   :  { %984 = vmatprep.subr.bf16.mxu1 %v1123_v14 }
  0x3f   :  { %378 = vmatpush2.bf16.msra.mxu0 %v1098_v54 }
  0x40   :  { %1001 = vmatprep.subr.bf16.mxu0 %v1133_v58 }
  0x41   :  { %985 = vmatpush3.bf16.msra.mxu1 %v1124_v15 }
  0x42   :  { %380 = vmatmul.mubr.bf16.vlgmr.msra.gmra.mxu0 %v1099_v55 }
  0x43   :  { %1002 = vmatpush3.bf16.msra.mxu0 %v1104_v59  ;;  %1017 = vmatprep.mubr.msk.bf16.mxu0 %vm1134_vm0, %v1133_v58 }
  0x44   :  { %1003 = vmatprep.subr.bf16.mxu0 %v1133_v58 }
  0x47   :  { %1004 = vmatpush3.bf16.msra.mxu0 %v1107_v62 }
  0x48   :  { %1005 = vmatprep.subr.bf16.mxu0 %v1133_v58 }
  0x4b   :  { %1006 = vmatpush3.bf16.msra.mxu0 %v1110_v1 }
  0x4c   :  { %1007 = vmatprep.subr.bf16.mxu0 %v1133_v58 }
  0x4f   :  { %1008 = vmatpush3.bf16.msra.mxu0 %v1113_v4 }
  0x50   :  { %1009 = vmatprep.subr.bf16.mxu0 %v1133_v58 }
  0x53   :  { %1010 = vmatpush3.bf16.msra.mxu0 %v1116_v7 }
  0x54   :  { %1011 = vmatprep.subr.bf16.mxu0 %v1133_v58 }
  0x57   :  { %1012 = vmatpush3.bf16.msra.mxu0 %v1119_v10 }
  0x58   :  { %1013 = vmatprep.subr.bf16.mxu0 %v1133_v58 }
  0x5b   :  { %1014 = vmatpush3.bf16.msra.mxu0 %v1122_v13 }
  0x5c   :  { %1015 = vmatprep.subr.bf16.mxu0 %v1133_v58 }
  0x5f   :  { %1016 = vmatpush3.bf16.msra.mxu0 %v1125_v16 }
  0x8a   :  { %v532_v59 = vpop.permute.xlu0 %531 }
  0x8b   :  { %v551_v55 = vpop.permute.xlu1 %550 }
  0x8e   :  { %v537_v6 = vpop.permute.xlu0 %536 }
  0x8f   :  { %v556_v2 = vpop.permute.xlu1 %555 }
  0xe4   :  { %v424_v17 = vpop.f32.mrf.mxu1 }
  0xe6   :  { %v426_v18 = vpop.f32.mrf.mxu1 }
  0xe8   :  { %v428_v22 = vpop.f32.mrf.mxu1 }
  0xea   :  { %v430_v16 = vpop.f32.mrf.mxu1 }
 0x102   :  { %v381_v19 = vpop.f32.mrf.mxu0 }
 0x103   :  { %v425_v24 = vadd.f32 %v424_v17, %v381_v19 }
 0x104   :  { %v383_v20 = vpop.f32.mrf.mxu0 }
 0x105   :  { %v1432_v21 = vadd.f32 %v426_v18, %v383_v20 }
 0x106   :  { %v385_v23 = vpop.f32.mrf.mxu0 }
 0x107   :  { %v429_v25 = vadd.f32 %v428_v22, %v385_v23 }
 0x108   :  { %v387_v15 = vpop.f32.mrf.mxu0 }
 0x109   :  { %v478_v26 = vadd.f32 %v429_v25, %v425_v24  ;;  %v431_v17 = vadd.f32 %v430_v16, %v387_v15 }
 0x10b   :  { %v479_v27 = vrot.slane %v478_v26, 4  ;;  %v435_v18 = vadd.f32 %v431_v17, %v1432_v21 }
 0x10d   :  { %v480_v28 = vadd.f32 %v479_v27, %v478_v26  ;;  %v436_v19 = vrot.slane %v435_v18, 4 }
 0x10f   :  { %v481_v29 = vrot.slane %v480_v28, 2  ;;  %v437_v20 = vadd.f32 %v436_v19, %v435_v18  ;;  %v941_v18 = vld [vmem:[%s1469_s10] ss:$0 sm:$0xff] }
 0x110   :  { %v969_v19 = vld [vmem:[%s1470_s8] ss:$0 sm:$0xff] }
 0x111   :  { %v482_v30 = vadd.f32 %v481_v29, %v480_v28  ;;  %v438_v22 = vrot.slane %v437_v20, 2 }
 0x113   :  { %v483_v31 = vrot.slane %v482_v30, 1  ;;  %v439_v23 = vadd.f32 %v438_v22, %v437_v20 }
 0x115   :  { %v484_v32 = vadd.f32 %v483_v31, %v482_v30 }
 0x117   :  { %v485_v33 = vmul.f32 0.0625, %v484_v32 }
 0x119   :  { %v486_v34 = vsub.f32 %v425_v24, %v485_v33  ;;  %v487_v35 = vsub.f32 %v429_v25, %v485_v33  ;;  %v440_v24 = vrot.slane %v439_v23, 1 }
 0x11b   :  { %v488_v36 = vmul.f32 %v486_v34, %v486_v34  ;;  %v489_v37 = vmul.f32 %v487_v35, %v487_v35  ;;  %v441_v25 = vadd.f32 %v440_v24, %v439_v23 }
 0x11d   :  { %v490_v38 = vadd.f32 %v489_v37, %v488_v36  ;;  %v443_v26 = vmul.f32 0.0625, %v441_v25 }
 0x11f   :  { %v491_v39 = vrot.slane %v490_v38, 4  ;;  %v444_v27 = vsub.f32 %v1432_v21, %v443_v26  ;;  %v445_v28 = vsub.f32 %v431_v17, %v443_v26 }
 0x121   :  { %v492_v40 = vadd.f32 %v491_v39, %v490_v38  ;;  %v446_v33 = vmul.f32 %v444_v27, %v444_v27 }
 0x123   :  { %v493_v41 = vrot.slane %v492_v40, 2 }
 0x125   :  { %v494_v42 = vadd.f32 %v493_v41, %v492_v40 }
 0x127   :  { %v495_v43 = vrot.slane %v494_v42, 1 }
 0x129   :  { %v496_v44 = vadd.f32 %v495_v43, %v494_v42 }
 0x12b   :  { %v497_v45 = vmul.f32 0.0625, %v496_v44 }
 0x12d   :  { %v498_v46 = vadd.f32 1e-05, %v497_v45 }
 0x12f   :  { %1126 = vrsqrt.f32 %v498_v46 }
 0x13c   :  { %v1127_v47 = vpop.eup %1126 }
 0x13d   :  { %v500_v50 = vmul.f32 %v1127_v47, %v486_v34  ;;  %v501_v51 = vmul.f32 %v1127_v47, %v487_v35  ;;  %v447_v34 = vmul.f32 %v445_v28, %v445_v28 }
 0x13f   :  { %v508_v53 = vmul.f32 %v942_v48, %v500_v50  ;;  %v509_v54 = vmul.f32 %v942_v48, %v501_v51  ;;  %v448_v40 = vadd.f32 %v447_v34, %v446_v33 }
 0x141   :  { %v516_v57 = vadd.f32 %v943_v52, %v508_v53  ;;  %v517_v58 = vadd.f32 %v943_v52, %v509_v54  ;;  %v449_v44 = vrot.slane %v448_v40, 4 }
 0x143   :  { %v519_v60 = vmax.f32 %v517_v58, 0.0  ;;  %v518_v61 = vmax.f32 %v516_v57, 0.0  ;;  %v450_v21 = vadd.f32 %v449_v44, %v448_v40 }
 0x145   :  { %v520_v62 = vrot.slane %v518_v61, 7  ;;  %v521_v63 = vrot.slane %v519_v60, 7  ;;  %v541_v0 = vrot.slane %v518_v61, 1  ;;  %v542_v1 = vrot.slane %v519_v60, 1 }
 0x146   :  { %v561_v3 = vpack.c.bf16 %v519_v60, %v518_v61  ;;  %v451_v49 = vrot.slane %v450_v21, 2 }
 0x147   :  { %v526_v4 = vsel %vm524_vm1, %v521_v63, %v520_v62  ;;  %v544_v5 = vsel %vm543_vm2, %v541_v0, %v542_v1  ;;  %v525_v7 = vsel %vm524_vm1, %v520_v62, %v521_v63  ;;  %v545_v8 = vsel %vm543_vm2, %v542_v1, %v541_v0 }
 0x148   :  { %v539_v9 = vmul.f32 %v532_v59, %v526_v4  ;;  %v558_v10 = vmul.f32 %v551_v55, %v544_v5  ;;  %v540_v11 = vmul.f32 %v537_v6, %v525_v7  ;;  %v559_v12 = vmul.f32 %v556_v2, %v545_v8  ;;  %787 = vmatprep.mubr.bf16.mxu1 %v561_v3 }
 0x149   :  { %v452_v52 = vadd.f32 %v451_v49, %v450_v21 }
 0x14a   :  { %v560_v13 = vpack.c.bf16 %v540_v11, %v539_v9  ;;  %v562_v14 = vpack.c.bf16 %v559_v12, %v558_v10  ;;  %v940_v11 = vld [vmem:[%s1467_s9] ss:$0 sm:$0xff] }
 0x14b   :  { %v453_v55 = vrot.slane %v452_v52, 1 }
 0x14c   :  { %788 = vmatmul.mubr.bf16.vlgmr.msra.gmra.mxu1 %v560_v13  ;;  %1018 = vmatmul.mubr.bf16.vlgmr.msra.gmra.mxu0 %v562_v14  ;;  %v968_v13 = vld [vmem:[%s1468_s7] ss:$0 sm:$0xff] }
 0x14d   :  { %v454_v60 = vadd.f32 %v453_v55, %v452_v52 }
 0x14f   :  { %v455_v63 = vmul.f32 0.0625, %v454_v60 }
 0x151   :  { %v456_v2 = vadd.f32 1e-05, %v455_v63 }
 0x153   :  { %1128 = vrsqrt.f32 %v456_v2 }
 0x160   :  { %v1129_v8 = vpop.eup %1128 }
 0x161   :  { %v458_v9 = vmul.f32 %v1129_v8, %v444_v27  ;;  %v459_v10 = vmul.f32 %v1129_v8, %v445_v28 }
 0x163   :  { %v466_v14 = vmul.f32 %v940_v11, %v458_v9  ;;  %v467_v15 = vmul.f32 %v940_v11, %v459_v10 }
 0x165   :  { %v474_v23 = vadd.f32 %v941_v18, %v466_v14  ;;  %v475_v24 = vadd.f32 %v941_v18, %v467_v15 }
 0x20c   :  { %v986_v29 = vpop.f32.mrf.mxu1  ;;  %v830_v30 = vpop.f32.mrf.mxu0 }
 0x20e   :  { %v987_v31 = vpop.f32.mrf.mxu1  ;;  %v1019_v32 = vpop.f32.mrf.mxu0 }
 0x20f   :  { %v988_v37 = vadd.f32 %v987_v31, %v986_v29 }
 0x210   :  { %v989_v35 = vpop.f32.mrf.mxu1  ;;  %v833_v36 = vpop.f32.mrf.mxu0 }
 0x211   :  { %v831_v42 = vadd.f32 %v988_v37, %v830_v30 }
 0x212   :  { %v990_v38 = vpop.f32.mrf.mxu1  ;;  %v1020_v39 = vpop.f32.mrf.mxu0 }
 0x213   :  { %v991_v41 = vadd.f32 %v990_v38, %v989_v35 }
 0x215   :  { %v834_v43 = vadd.f32 %v991_v41, %v833_v36 }
 0x217   :  { %v839_v45 = vadd.f32 %v834_v43, %v831_v42 }
 0x219   :  { %v840_v46 = vrot.slane %v839_v45, 4 }
 0x21b   :  { %v841_v47 = vadd.f32 %v840_v46, %v839_v45 }
 0x21d   :  { %v842_v48 = vrot.slane %v841_v47, 2 }
 0x21f   :  { %v843_v50 = vadd.f32 %v842_v48, %v841_v47 }
 0x221   :  { %v844_v51 = vrot.slane %v843_v50, 1 }
 0x223   :  { %v845_v53 = vadd.f32 %v844_v51, %v843_v50 }
 0x225   :  { %v846_v54 = vmul.f32 0.0625, %v845_v53 }
 0x227   :  { %v847_v56 = vsub.f32 %v831_v42, %v846_v54  ;;  %v848_v57 = vsub.f32 %v834_v43, %v846_v54 }
 0x229   :  { %v849_v58 = vmul.f32 %v847_v56, %v847_v56  ;;  %v850_v59 = vmul.f32 %v848_v57, %v848_v57 }
 0x22b   :  { %v851_v61 = vadd.f32 %v850_v59, %v849_v58 }
 0x22d   :  { %v852_v62 = vrot.slane %v851_v61, 4 }
 0x22f   :  { %v853_v0 = vadd.f32 %v852_v62, %v851_v61 }
 0x231   :  { %v854_v1 = vrot.slane %v853_v0, 2 }
 0x233   :  { %v855_v3 = vadd.f32 %v854_v1, %v853_v0 }
 0x235   :  { %v856_v4 = vrot.slane %v855_v3, 1 }
 0x237   :  { %v857_v5 = vadd.f32 %v856_v4, %v855_v3 }
 0x239   :  { %v858_v6 = vmul.f32 0.0625, %v857_v5 }
 0x23b   :  { %v859_v7 = vadd.f32 1e-05, %v858_v6 }
 0x23d   :  { %1130 = vrsqrt.f32 %v859_v7 }
 0x24a   :  { %v1131_v12 = vpop.eup %1130 }
 0x24b   :  { %v861_v16 = vmul.f32 %v1131_v12, %v847_v56  ;;  %v862_v17 = vmul.f32 %v1131_v12, %v848_v57 }
 0x24d   :  { %v869_v20 = vmul.f32 %v968_v13, %v861_v16  ;;  %v870_v22 = vmul.f32 %v968_v13, %v862_v17 }
 0x24f   :  { %v877_v25 = vadd.f32 %v969_v19, %v869_v20  ;;  %v878_v26 = vadd.f32 %v969_v19, %v870_v22 }
 0x251   :  { %v879_v27 = vadd.f32 %v877_v25, %v474_v23  ;;  %v880_v28 = vadd.f32 %v878_v26, %v475_v24 }
 0x253   :  { %v881_v29 = vmax.f32 %v879_v27, 0.0  ;;  %v882_v30 = vmax.f32 %v880_v28, 0.0 }
 0x255   :  { %883 = vst [vmem:[%s1471_s11] sm:$0xff] %v881_v29  ;;  %884 = vst [vmem:[%s1471_s11 + $0x8] sm:$0xff] %v882_v30 }

</bundles_post_ra>
